<compile_context>
chip_gen: v7x
topology: tpu7x:2x2x1
jax: 0.10.0
libtpu: 0.0.40
codegen_flags: <defaults>
</compile_context>

<pallas_src>
import functools
import math

import jax
import jax.numpy as jnp
from jax.experimental import pallas as pl
from jax.experimental.pallas import tpu as pltpu


# --------------------------------------------------------------------------- #
# Kernel
# --------------------------------------------------------------------------- #
def _vectorized_linear_kernel(x_ref, w_ref, b_ref, o_ref, *scratch,
                              eblk: int, dout: int, pack_out: bool,
                              acc_in_out: bool):
    """x:(eblk,tm,tk)  w:(eblk,tk,tn)  b:(eblk,1,tn)
    o: (eblk,tm,tn)  or  (tm, eblk*dout) when pack_out (lane-dense packed)."""
    k = pl.program_id(3)
    acc_ref = o_ref if acc_in_out else scratch[0]

    @pl.when(k == 0)
    def _():
        acc_ref[...] = jnp.zeros_like(acc_ref)

    # Batched matmul over fused ensemble members -> MXU, f32 accumulation.
    acc_ref[...] += jnp.einsum(
        "emk,ekn->emn", x_ref[...], w_ref[...],
        preferred_element_type=jnp.float32)

    @pl.when(k == pl.num_programs(3) - 1)
    def _():
        if acc_in_out:
            # f32 output doubles as the accumulator: add the bias in place.
            o_ref[...] += b_ref[...].astype(jnp.float32)
        elif pack_out:
            # Lane-dense packed output block (tm, eblk*dout).
            for e in range(eblk):                     # static unroll
                val = acc_ref[e] + b_ref[e].astype(jnp.float32)
                o_ref[:, e * dout:(e + 1) * dout] = val.astype(o_ref.dtype)
        else:
            o_ref[...] = (acc_ref[...] + b_ref[...].astype(jnp.float32)
                          ).astype(o_ref.dtype)


# --------------------------------------------------------------------------- #
# Tiling helpers
# --------------------------------------------------------------------------- #
def _round_up(x: int, m: int) -> int:
    return ((x + m - 1) // m) * m


def _pick_tile(dim: int, target: int, aligns=(256, 128)) -> int:
    """Largest divisor of `dim` <= target that is a multiple of one of `aligns`
    (preferring earlier entries, i.e. 256 for the v6e/v7x MXU), else the full dim."""
    if dim <= target:
        return dim
    for align in aligns:
        t = (target // align) * align
        while t >= align:
            if dim % t == 0:
                return t
            t -= align
    return dim


def _working_set_bytes(eblk, tm, tk, tn, in_item, out_item, w_bufs, use_acc):
    x_b = 2 * eblk * tm * tk * in_item            # double-buffered x tiles
    w_b = w_bufs * eblk * tk * tn * in_item       # weight tiles (2- or 3-deep)
    b_b = 2 * eblk * tn * 4                       # bias tiles
    o_b = 2 * eblk * tm * tn * out_item           # output tiles
    a_b = eblk * tm * tn * 4 if use_acc else 0    # f32 accumulator scratch
    return x_b + w_b + b_b + o_b + a_b


def _vmem_capacity_bytes() -> int:
    try:
        info = pltpu.get_tpu_info()
        cap = getattr(info, "vmem_capacity_bytes", None)
        if cap:
            return int(cap)
    except Exception:
        pass
    return 64 << 20   # conservative (v7x-sized) default


def _pick_tm(B, tk, tn, in_item, out_item, w_bufs, budget, align_m):
    def fits(tm):
        return _working_set_bytes(1, tm, tk, tn, in_item, out_item,
                                  w_bufs, True) <= budget
    if fits(B):
        return B                       # stream each weight tile exactly once
    t = (B // align_m) * align_m       # largest aligned divisor that fits
    while t >= align_m:
        if B % t == 0 and fits(t):
            return t
        t -= align_m
    t = align_m                        # smallest aligned divisor (vmem_limit stretches)
    while t < B:
        if B % t == 0:
            return t
        t += align_m
    return B


def _pick_eblk(E, tm, tk, tn, in_item, out_item, w_bufs, budget, cap_e):
    cap_e = max(1, min(E, cap_e))
    best = 1
    for cand in range(1, cap_e + 1):
        if E % cand:
            continue
        if _working_set_bytes(cand, tm, tk, tn, in_item, out_item,
                              w_bufs, True) <= budget:
            best = cand
    return best


def _pad_axis(a, axis, new_size):
    pad = new_size - a.shape[axis]
    if pad <= 0:
        return a
    widths = [(0, 0)] * a.ndim
    widths[axis] = (0, pad)
    return jnp.pad(a, widths)


# --------------------------------------------------------------------------- #
# Wrapper
# --------------------------------------------------------------------------- #
def vectorized_linear(x: jax.Array, weight: jax.Array, bias: jax.Array, *,
                      compute_dtype=None,
                      tk_target: int = 512, tn_target: int = 512) -> jax.Array:
    """x:(E,B,Din), weight:(E,Din,Dout), bias:(E,1,Dout) -> (E,B,Dout)."""
    E, B, Din = x.shape
    _, _, Dout = weight.shape
    assert weight.shape == (E, Din, Dout)
    assert bias.shape == (E, 1, Dout)

    out_dtype = x.dtype

    # Optional low-precision feed (weight bandwidth); accumulation stays f32.
    if compute_dtype is not None:
        x = x.astype(compute_dtype)
        weight = weight.astype(compute_dtype)

    # Pad awkward (non-128-divisible) contraction / output dims instead of using
    # full-dim blocks that can silently blow past the VMEM estimate.
    Din_p = _round_up(Din, 128) if Din > 128 else Din
    Dout_p = _round_up(Dout, 128) if Dout > 128 else Dout
    if Din_p != Din:
        x = _pad_axis(x, 2, Din_p)
        weight = _pad_axis(weight, 1, Din_p)
    if Dout_p != Dout:
        weight = _pad_axis(weight, 2, Dout_p)
        bias = _pad_axis(bias, 2, Dout_p)

    in_item = max(jnp.dtype(x.dtype).itemsize, jnp.dtype(weight.dtype).itemsize)
    out_item = jnp.dtype(out_dtype).itemsize

    # ---- tile selection ----------------------------------------------------
    tn = _pick_tile(Dout_p, tn_target)          # lane dim of w / bias / out
    tk = _pick_tile(Din_p, tk_target)           # lane dim of x, sublane dim of w
    n_k = Din_p // tk
    w_bufs = 3 if n_k >= 3 else 2               # deeper weight pipeline if K-streamed

    vmem_cap = _vmem_capacity_bytes()
    budget = min(vmem_cap // 4, 32 << 20)       # ~16 MiB on v7x, 32 MiB on v5e/v6e

    align_m = 8 * max(1, 4 // in_item)          # sublane packing: 8 / 16 / 32
    tm = _pick_tm(B, tk, tn, in_item, out_item, w_bufs, budget, align_m)

    n_m = B // tm
    n_n = Dout_p // tn

    # Ensemble fusion (amortizes ~0.35us/step at small B) while keeping at least one
    # "parallel" grid axis of extent >= 2 for v7x's two TensorCores.
    cap_e = E if (n_m > 1 or n_n > 1) else max(1, E // 2)
    cap_e = min(cap_e, max(1, 512 // max(tm, 1)))
    eblk = _pick_eblk(E, tm, tk, tn, in_item, out_item, w_bufs, budget, cap_e)

    # Lane-dense output packing when Dout is lane-sparse (< 128).
    pack_out = (Dout < 128) and (Dout_p == Dout) and (tn == Dout) and (eblk > 1)
    acc_in_out = (jnp.dtype(out_dtype) == jnp.float32) and not pack_out

    grid = (E // eblk, n_m, n_n, n_k)

    # ---- specs ---------------------------------------------------------------
    x_spec = pl.BlockSpec((eblk, tm, tk), lambda e, m, n, k: (e, m, k))
    b_spec = pl.BlockSpec((eblk, 1, tn), lambda e, m, n, k: (e, 0, n))

    w_index = lambda e, m, n, k: (e, k, n)
    w_spec = pl.BlockSpec((eblk, tk, tn), w_index)
    if w_bufs == 3:
        try:   # 3-deep weight pipeline hides DMA issue latency at small per-step compute
            w_spec = pl.BlockSpec((eblk, tk, tn), w_index,
                                  pipeline_mode=pl.Buffered(buffer_count=3))
        except (TypeError, AttributeError):
            w_bufs = 2

    if pack_out:
        out_shape = jax.ShapeDtypeStruct((E // eblk, B, eblk * Dout), out_dtype)
        o_spec = pl.BlockSpec((None, tm, eblk * Dout), lambda e, m, n, k: (e, m, 0))
    else:
        out_shape = jax.ShapeDtypeStruct((E, B, Dout_p), out_dtype)
        o_spec = pl.BlockSpec((eblk, tm, tn), lambda e, m, n, k: (e, m, n))

    scratch_shapes = [] if acc_in_out else [pltpu.VMEM((eblk, tm, tn), jnp.float32)]

    ws = _working_set_bytes(eblk, tm, tk, tn, in_item, out_item, w_bufs,
                            use_acc=not acc_in_out)
    # No oversized floor; leave >= 16 MiB of physical VMEM as headroom (48 MiB cap on v7x).
    vmem_limit = int(max(16 << 20, min(2 * ws + (2 << 20), vmem_cap - (16 << 20))))

    cost = pl.CostEstimate(
        flops=2 * E * B * Din_p * Dout_p,
        bytes_accessed=(
            x.size * in_item * n_n                 # x re-read once per N block
            + weight.size * in_item * n_m          # weights re-read once per M block
            + bias.size * jnp.dtype(bias.dtype).itemsize * n_m
            + E * B * Dout_p * out_item),
        transcendentals=0)

    kernel = functools.partial(
        _vectorized_linear_kernel,
        eblk=eblk, dout=Dout, pack_out=pack_out, acc_in_out=acc_in_out)

    out = pl.pallas_call(
        kernel,
        out_shape=out_shape,
        grid_spec=pltpu.PrefetchScalarGridSpec(
            num_scalar_prefetch=0,
            grid=grid,
            in_specs=[x_spec, w_spec, b_spec],
            out_specs=o_spec,
            scratch_shapes=scratch_shapes),
        compiler_params=pltpu.CompilerParams(
            dimension_semantics=("parallel", "parallel", "parallel", "arbitrary"),
            vmem_limit_bytes=vmem_limit),
        cost_estimate=cost,
    )(x, weight, bias)

    if pack_out:
        out = out.reshape(E // eblk, B, eblk, Dout)
        out = jnp.transpose(out, (0, 2, 1, 3)).reshape(E, B, Dout)
    elif Dout_p != Dout:
        out = out[..., :Dout]
    return out


# --------------------------------------------------------------------------- #
# Init (mirrors VectorizedLinear.reset_parameters) and reference
# --------------------------------------------------------------------------- #
def init_params(key, in_features: int, out_features: int, ensemble_size: int):
    kw, kb = jax.random.split(key)
    # kaiming_uniform_(a=sqrt(5)) on a (in, out) tensor: fan_in = out_features
    # -> bound = 1 / sqrt(out_features); same bound for the bias.
    bound = 1.0 / math.sqrt(out_features)
    weight = jax.random.uniform(
        kw, (ensemble_size, in_features, out_features),
        minval=-bound, maxval=bound, dtype=jnp.float32)
    bias = jax.random.uniform(
        kb, (ensemble_size, 1, out_features),
        minval=-bound, maxval=bound, dtype=jnp.float32)
    return weight, bias


def _reference(x, weight, bias):
    return jnp.einsum("ebi,eio->ebo", x, weight) + bias


if __name__ == "__main__":
    key = jax.random.PRNGKey(0)
    keys = jax.random.split(key, 8)

    # 1) module-consistent small shapes: hits lane-packed output path (Dout=32 < 128)
    E, B, Din, Dout = 4, 8, 32, 32
    w1, b1 = init_params(keys[0], Din, Dout, E)
    x1 = jax.random.normal(keys[1], (E, B, Din), dtype=jnp.float32)
    out1 = jax.block_until_ready(vectorized_linear(x1, w1, b1))
    assert out1.shape == (E, B, Dout)
    assert jnp.allclose(out1, _reference(x1, w1, b1), atol=1e-5, rtol=1e-5)

    # 2) larger dims: accumulate-directly-in-f32-output path (no scratch, unpacked)
    E2, B2, Din2, Dout2 = 3, 16, 256, 384
    w2, b2 = init_params(keys[2], Din2, Dout2, E2)
    x2 = jax.random.normal(keys[3], (E2, B2, Din2), dtype=jnp.float32)
    out2 = jax.block_until_ready(vectorized_linear(x2, w2, b2))
    assert jnp.allclose(out2, _reference(x2, w2, b2), atol=1e-3, rtol=1e-3)

    # 3) K-tiled path: 4 K-steps (3-deep weight pipeline); Dout=64 packs to 128 lanes
    E3, B3, Din3, Dout3 = 4, 8, 512, 64
    w3, b3 = init_params(keys[4], Din3, Dout3, E3)
    x3 = jax.random.normal(keys[5], (E3, B3, Din3), dtype=jnp.float32)
    out3 = jax.block_until_ready(vectorized_linear(x3, w3, b3, tk_target=128))
    assert jnp.allclose(out3, _reference(x3, w3, b3), atol=1e-3, rtol=1e-3)

    # 4) bf16-fed weights/activations (memory-bound regime), f32 accumulation/output
    out4 = jax.block_until_ready(
        vectorized_linear(x1, w1, b1, compute_dtype=jnp.bfloat16))
    assert out4.dtype == jnp.float32
    assert jnp.allclose(out4, _reference(x1, w1, b1), atol=5e-2, rtol=5e-2)

    # 5) awkward (non-128-divisible) dims -> wrapper zero-padding + output slice
    E5, B5, Din5, Dout5 = 2, 4, 200, 160
    w5, b5 = init_params(keys[6], Din5, Dout5, E5)
    x5 = jax.random.normal(keys[7], (E5, B5, Din5), dtype=jnp.float32)
    out5 = jax.block_until_ready(vectorized_linear(x5, w5, b5))
    assert out5.shape == (E5, B5, Dout5)
    assert jnp.allclose(out5, _reference(x5, w5, b5), atol=1e-3, rtol=1e-3)

    print("KERNEL_OK")
</pallas_src>

<mosaic_0001>
module attributes {stable_mosaic.version = 11 : i64} {
  func.func @_vectorized_linear_kernel(%arg0: i32, %arg1: i32, %arg2: i32, %arg3: i32, %arg4: memref<2x8x32xf32, #tpu.memory_space<vmem>>, %arg5: memref<2x32x32xf32, #tpu.memory_space<vmem>>, %arg6: memref<2x1x32xf32, #tpu.memory_space<vmem>>, %arg7: memref<1x8x64xf32, #tpu.memory_space<vmem>>, %arg8: memref<2x8x32xf32, #tpu.memory_space<vmem>>) attributes {dimension_semantics = [#tpu.dimension_semantics<parallel>, #tpu.dimension_semantics<parallel>, #tpu.dimension_semantics<parallel>, #tpu.dimension_semantics<arbitrary>], iteration_bounds = array<i64: 2, 1, 1, 1>, scalar_prefetch = 0 : i64, scratch_operands = 1 : i64, tpu.core_type = #tpu.core_type<tc>, window_params = [{transform_indices = @transform_0, window_bounds = array<i64: 2, 8, 32>}, {transform_indices = @transform_1, window_bounds = array<i64: 2, 32, 32>}, {transform_indices = @transform_2, window_bounds = array<i64: 2, 1, 32>}, {transform_indices = @transform_3, window_bounds = array<i64: 1, 8, 64>}]} {
    %c0_i32 = arith.constant 0 : i32
    %0 = arith.cmpi eq, %arg3, %c0_i32 : i32
    %1 = arith.extui %0 : i1 to i32
    %c0_i32_0 = arith.constant 0 : i32
    %2 = arith.cmpi ne, %1, %c0_i32_0 : i32
    scf.if %2 {
      %cst_14 = arith.constant 0.000000e+00 : f32
      %12 = vector.broadcast %cst_14 : f32 to vector<2x8x32xf32>
      %c0_15 = arith.constant 0 : index
      %c0_16 = arith.constant 0 : index
      %c0_17 = arith.constant 0 : index
      %13 = vector.load %arg8[%c0_15, %c0_16, %c0_17] : memref<2x8x32xf32, #tpu.memory_space<vmem>>, vector<2x8x32xf32>
      tpu.vector_store %arg8[%c0_15, %c0_16, %c0_17], %12 {strides = array<i32>} : memref<2x8x32xf32, #tpu.memory_space<vmem>>, vector<2x8x32xf32>,
    } else {
    }
    %c0 = arith.constant 0 : index
    %c0_1 = arith.constant 0 : index
    %c0_2 = arith.constant 0 : index
    %3 = vector.load %arg8[%c0, %c0_1, %c0_2] : memref<2x8x32xf32, #tpu.memory_space<vmem>>, vector<2x8x32xf32>
    %c0_3 = arith.constant 0 : index
    %c0_4 = arith.constant 0 : index
    %c0_5 = arith.constant 0 : index
    %4 = vector.load %arg4[%c0_3, %c0_4, %c0_5] : memref<2x8x32xf32, #tpu.memory_space<vmem>>, vector<2x8x32xf32>
    %c0_6 = arith.constant 0 : index
    %c0_7 = arith.constant 0 : index
    %c0_8 = arith.constant 0 : index
    %5 = vector.load %arg5[%c0_6, %c0_7, %c0_8] : memref<2x32x32xf32, #tpu.memory_space<vmem>>, vector<2x32x32xf32>
    "tpu.trace_start"() <{level = 10 : i32, message = "emk,ekn->emn"}> : () -> ()
    %cst = arith.constant dense<0.000000e+00> : vector<2x8x32xf32>
    %6 = tpu.matmul %4, %5, %cst {dimension_numbers = #tpu.dot_dimension_numbers<[2], [1], [1], [2], [0, 0, 0, 1, 1, 2], [0], [0]>} : vector<2x8x32xf32>, vector<2x32x32xf32>, vector<2x8x32xf32> -> vector<2x8x32xf32>
    "tpu.trace_stop"() : () -> ()
    %7 = arith.addf %3, %6 : vector<2x8x32xf32>
    %c0_9 = arith.constant 0 : index
    %c0_10 = arith.constant 0 : index
    %c0_11 = arith.constant 0 : index
    %8 = vector.load %arg8[%c0_9, %c0_10, %c0_11] : memref<2x8x32xf32, #tpu.memory_space<vmem>>, vector<2x8x32xf32>
    tpu.vector_store %arg8[%c0_9, %c0_10, %c0_11], %7 {strides = array<i32>} : memref<2x8x32xf32, #tpu.memory_space<vmem>>, vector<2x8x32xf32>,
    %c0_i32_12 = arith.constant 0 : i32
    %9 = arith.cmpi eq, %arg3, %c0_i32_12 : i32
    %10 = arith.extui %9 : i1 to i32
    %c0_i32_13 = arith.constant 0 : i32
    %11 = arith.cmpi ne, %10, %c0_i32_13 : i32
    scf.if %11 {
      %c0_14 = arith.constant 0 : index
      %c0_15 = arith.constant 0 : index
      %c0_16 = arith.constant 0 : index
      %12 = vector.load %arg8[%c0_14, %c0_15, %c0_16] : memref<2x8x32xf32, #tpu.memory_space<vmem>>, vector<1x8x32xf32>
      %13 = vector.shape_cast %12 : vector<1x8x32xf32> to vector<8x32xf32>
      %c0_17 = arith.constant 0 : index
      %c0_18 = arith.constant 0 : index
      %c0_19 = arith.constant 0 : index
      %14 = vector.load %arg6[%c0_17, %c0_18, %c0_19] : memref<2x1x32xf32, #tpu.memory_space<vmem>>, vector<1x1x32xf32>
      %15 = vector.shape_cast %14 : vector<1x1x32xf32> to vector<1x32xf32>
      %16 = vector.broadcast %15 : vector<1x32xf32> to vector<8x32xf32>
      %17 = arith.addf %13, %16 : vector<8x32xf32>
      %c0_20 = arith.constant 0 : index
      %c0_21 = arith.constant 0 : index
      %c0_22 = arith.constant 0 : index
      %18 = vector.load %arg7[%c0_20, %c0_21, %c0_22] : memref<1x8x64xf32, #tpu.memory_space<vmem>>, vector<1x8x32xf32>
      %19 = vector.shape_cast %18 : vector<1x8x32xf32> to vector<8x32xf32>
      %20 = vector.shape_cast %17 : vector<8x32xf32> to vector<1x8x32xf32>
      tpu.vector_store %arg7[%c0_20, %c0_21, %c0_22], %20 {strides = array<i32>} : memref<1x8x64xf32, #tpu.memory_space<vmem>>, vector<1x8x32xf32>,
      %c1 = arith.constant 1 : index
      %c0_23 = arith.constant 0 : index
      %c0_24 = arith.constant 0 : index
      %21 = vector.load %arg8[%c1, %c0_23, %c0_24] : memref<2x8x32xf32, #tpu.memory_space<vmem>>, vector<1x8x32xf32>
      %22 = vector.shape_cast %21 : vector<1x8x32xf32> to vector<8x32xf32>
      %c1_25 = arith.constant 1 : index
      %c0_26 = arith.constant 0 : index
      %c0_27 = arith.constant 0 : index
      %23 = vector.load %arg6[%c1_25, %c0_26, %c0_27] : memref<2x1x32xf32, #tpu.memory_space<vmem>>, vector<1x1x32xf32>
      %24 = vector.shape_cast %23 : vector<1x1x32xf32> to vector<1x32xf32>
      %25 = vector.broadcast %24 : vector<1x32xf32> to vector<8x32xf32>
      %26 = arith.addf %22, %25 : vector<8x32xf32>
      %c0_28 = arith.constant 0 : index
      %c0_29 = arith.constant 0 : index
      %c32 = arith.constant 32 : index
      %27 = vector.load %arg7[%c0_28, %c0_29, %c32] : memref<1x8x64xf32, #tpu.memory_space<vmem>>, vector<1x8x32xf32>
      %28 = vector.shape_cast %27 : vector<1x8x32xf32> to vector<8x32xf32>
      %29 = vector.shape_cast %26 : vector<8x32xf32> to vector<1x8x32xf32>
      tpu.vector_store %arg7[%c0_28, %c0_29, %c32], %29 {strides = array<i32>} : memref<1x8x64xf32, #tpu.memory_space<vmem>>, vector<1x8x32xf32>,
    } else {
    }
    return
  }
  func.func @transform_0(%arg0: i32, %arg1: i32, %arg2: i32, %arg3: i32) -> (i32, i32, i32) {
    %c0_i32 = arith.constant 0 : i32
    return %arg0, %arg1, %arg3 : i32, i32, i32
  }
  func.func @transform_1(%arg0: i32, %arg1: i32, %arg2: i32, %arg3: i32) -> (i32, i32, i32) {
    %c0_i32 = arith.constant 0 : i32
    return %arg0, %arg3, %arg2 : i32, i32, i32
  }
  func.func @transform_2(%arg0: i32, %arg1: i32, %arg2: i32, %arg3: i32) -> (i32, i32, i32) {
    %c0_i32 = arith.constant 0 : i32
    %c0_i32_0 = arith.constant 0 : i32
    return %arg0, %c0_i32, %arg2 : i32, i32, i32
  }
  func.func @transform_3(%arg0: i32, %arg1: i32, %arg2: i32, %arg3: i32) -> (i32, i32, i32) {
    %c0_i32 = arith.constant 0 : i32
    %c0_i32_0 = arith.constant 0 : i32
    return %arg0, %arg1, %c0_i32 : i32, i32, i32
  }
}

</mosaic_0001>

<bundles_post_ra>
// kernel: tpu_custom_call.1
= control target key start
LH: loop header
LB: loop body
LE: loop exit
PB: predicated region body
PF: predicated region fallthrough
CT: control target
= control target key end

     0   :  { %8 = vsyncpa [#allocation4], 0  ;;  %s1213_s0 = inlined_call_operand.hbm [shape: f32[4,8,32], index: 0, kind: input, shape index: {}]   ;;  %s1214_s1 = inlined_call_operand.hbm [shape: f32[4,32,32], index: 1, kind: input, shape index: {}]   ;;  %s1215_s2 = inlined_call_operand.vmem [shape: f32[4,1,32], index: 2, kind: input, shape index: {}]   ;;  %s1216_s3 = inlined_call_operand.hbm [shape: f32[2,8,64], index: 3, kind: output, shape index: {}]  }
   0x1   :  { %10 = vsyncpa [#allocation4 + $0x1], 0 }
   0x2   :  { %11 = vsyncpa [#allocation7], 0 }
   0x3   :  { %13 = vsyncpa [#allocation7 + $0x1], 0 }
   0x4   :  { %14 = vsyncpa [#allocation5], 0 }
   0x5   :  { %16 = vsyncpa [#allocation5 + $0x1], 0  ;;  %s968_s12 = smov 0   ;;  %s970_s13 = smov 0  }
   0x6   :  { %s972_s14 = smov 0   ;;  %s974_s15 = smov 0  }
   0x7   :  { %s976_s16 = smov 0   ;;  %s978_s17 = smov 0  }
   0x8 LB: > { %s646_s18 = sadd.s32 4294967295, %s937_s17   ;;  %s647_s19 = sadd.s32 4294967294, %s937_s17   ;;  %s937_s17 = sphi %s978_s17, %s22_s17   ;;  %s933_s16 = sphi %s976_s16, %s1234_s16   ;;  %s929_s15 = sphi %s974_s15, %s1233_s15   ;;  %s925_s14 = sphi %s972_s14, %s1232_s14   ;;  %s921_s13 = sphi %s970_s13, %s1231_s13   ;;  %s917_s12 = sphi %s968_s12, %s1230_s12  }
   0x9   : > { %s48_s20 = sadd.s32 1, %s933_s16  ;;  %s59_s21 = sadd.s32 1, %s925_s14 }
   0xa   : > { %p50_p0 = scmp.ge.s32.totalorder %s48_s20, 2  ;;  %p66_p1 = scmp.ne.s32.totalorder %s925_s14, %s921_s13 }
   0xb   : > { %p67_p2 = scmp.eq.s32.totalorder %s937_s17, 0  ;;  %p72_p3 = scmp.ne.s32.totalorder %s921_s13, %s917_s12 }
   0xc   : > { %s1236_s20 = smov (%p50_p0, %s48_s20), 0  ;;  %p73_p5 = scmp.eq.s32.totalorder %s646_s18, 0 }
   0xd   : > { %p1009_p4 = por %p67_p2, %p66_p1  ;;  %s52_s23 = ssub.s32 %s933_s16, %s1236_s20 }
   0xe   : > { %p156_p6 = scmp.eq.s32.totalorder %s646_s18, 1  ;;  %p57_p7 = scmp.eq.s32.totalorder %s52_s23, 0 }
   0xf   : > { %p1015_p8 = por %p73_p5, %p72_p3  ;;  %p162_p10 = scmp.eq.s32.totalorder %s647_s19, 1 }
  0x10   : > { %p1019_p9 = por %p156_p6, %p66_p1  ;;  %p735_p13 = scmp.lt.s32.totalorder %s937_s17, 2 }
  0x11   : > { %s1220_s24 = scalar_select %p1015_p8, 1, 0 }
  0x12   : > { %s1221_s25 = scalar_select %p1019_p9, 1, 0 }
  0x13   : > { %s1024_s26 = scalar_select %p57_p7, %s925_s14, %s59_s21  }
  0x14   : > { %p1026_p11 = por %p162_p10, %p72_p3  ;;  %s1033_s28 = sand.u32 1, %s925_s14  }
  0x15   : > { %s650_s29 = sshll.u32 %s1033_s28, 4  ;;  %s671_s30 = sshll.u32 %s933_s16, 8 }
  0x16   : > { %s1222_s27 = scalar_select %p1026_p11, 1, 0 }
  0x17   : > { %s1040_s6 = scalar_lea.hbm %s1213_s0, %s671_s30  ;;  %s186_s7 = scalar_lea.vmem [#allocation3], %s650_s29 }
  0x18   : > { %s195_s8 = sshll.u32 %s186_s7, 4  ;;  %p1046_p0 = pnand %p735_p13, %p1009_p4  ;;  %s1042_s8 = int_to_ptr.vmem [resolvable:$true] %s195_s8 }
  0x19   : > { %s183_s10 = scalar_lea.sflag [#allocation4], %s1033_s28  ;;  %s791_s11 = scalar_lea.hbm %s1040_s6, 256 }
  0x1a   : > { %p792_p2 = scmp.ne.s32.totalorder %s1040_s6, %s791_s11  ;;  %p793_p3 = pneg %p1046_p0 }
  0x1b   : > { %s796_s21 = scalar_lea.hbm %s1213_s0, 512  ;;  %p797_p4 = scmp.lt.u32.totalorder %s1040_s6, %s1213_s0 }
  0x1c   : > { %p794_p5 = pnand %p793_p3, %p792_p2  ;;  %p798_p7 = scmp.lt.u32.totalorder %s796_s21, %s791_s11 }
  0x1d   : > { %p800_p13 = scmp.lt.u32.totalorder %s791_s11, %s1040_s6 }
  0x1e   : > { %p795_p6 = pneg %p794_p5  ;;  %p799_p10 = por %p798_p7, %p797_p4 }
  0x20   : > { %p801_p12 = por %p800_p13, %p799_p10 }
  0x22   : > { %p802_p1 = pnand %p801_p12, %p795_p6 }
  0x24   : > { %805 = shalt.err (!%p802_p1)
}
  0x25   : > { %s806_s29 = scalar_lea.vmem %s1042_s8, 256  ;;  %s939_s30 = smov [#allocation3]  }
  0x26   : > { %p807_p2 = scmp.ne.s32.totalorder %s1042_s8, %s806_s29  ;;  %s811_s4 = sshll.u32 %s939_s30, 4  ;;  %s812_s4 = int_to_ptr.vmem [resolvable:$false] %s811_s4 }
  0x27   : > { %s813_s5 = scalar_lea.vmem %s812_s4, 512  ;;  %p814_p9 = scmp.lt.s32.totalorder %s1042_s8, %s812_s4 }
  0x28   : > { %p809_p5 = pnand %p807_p2, %p793_p3  ;;  %p815_p4 = scmp.lt.s32.totalorder %s813_s5, %s806_s29 }
  0x2a   : > { %p810_p11 = pneg %p809_p5  ;;  %p816_p7 = por %p815_p4, %p814_p9 }
  0x2c   : > { %p817_p10 = pnand %p816_p7, %p810_p11 }
  0x2e   : > { %820 = shalt.err (!%p817_p10)
}
  0x2f   : > { %s940_s7 = smov 128   ;;  %s941_s11 = smov 8  }
  0x30   : > { %727 = dma.hbm_to_vmem [thread:$0]  (!%p1046_p0), %s1040_s6, 256, %s1042_s8, %s183_s10, %s940_s7, %s940_s7, %s941_s11  }
  0x31   : > { %p239_p9 = scmp.lt.s32.totalorder %s937_s17, 3  ;;  %s653_s18 = sshll.u32 %s1033_s28, 6 }
  0x32   : > { %s673_s19 = sshll.u32 %s933_s16, 10  ;;  %p1224_p11 = scmp.ge.s32.totalorder %s937_s17, 1 }
  0x33   : > { %s1094_s29 = scalar_lea.hbm %s1214_s1, %s673_s19  ;;  %s209_s30 = scalar_lea.vmem [#allocation6], %s653_s18 }
  0x34   : > { %p1087_p12 = pnand %p1224_p11, %p239_p9  ;;  %s220_s4 = sshll.u32 %s209_s30, 4  ;;  %s1096_s4 = int_to_ptr.vmem [resolvable:$true] %s220_s4 }
  0x35   : > { %s206_s6 = scalar_lea.sflag [#allocation7], %s1033_s28  ;;  %s821_s8 = scalar_lea.hbm %s1094_s29, 1024 }
  0x36   : > { %p822_p1 = scmp.ne.s32.totalorder %s1094_s29, %s821_s8  ;;  %s826_s19 = scalar_lea.hbm %s1214_s1, 2048 }
  0x37   : > { %p827_p2 = scmp.lt.u32.totalorder %s1094_s29, %s1214_s1  ;;  %p828_p5 = scmp.lt.u32.totalorder %s826_s19, %s821_s8 }
  0x38   : > { %p824_p6 = pnand %p822_p1, %p793_p3  ;;  %p830_p7 = scmp.lt.u32.totalorder %s821_s8, %s1094_s29 }
  0x39   : > { %p829_p4 = por %p828_p5, %p827_p2 }
  0x3a   : > { %p825_p13 = pneg %p824_p6 }
  0x3b   : > { %p831_p10 = por %p830_p7, %p829_p4 }
  0x3d   : > { %p832_p9 = pnand %p831_p10, %p825_p13 }
  0x3f   : > { %835 = shalt.err (!%p832_p9)
}
  0x40   : > { %s836_s18 = scalar_lea.vmem %s1096_s4, 1024  ;;  %s942_s30 = smov [#allocation6]  }
  0x41   : > { %p837_p11 = scmp.ne.s32.totalorder %s1096_s4, %s836_s18  ;;  %s841_s10 = sshll.u32 %s942_s30, 4  ;;  %s842_s10 = int_to_ptr.vmem [resolvable:$false] %s841_s10 }
  0x42   : > { %s843_s5 = scalar_lea.vmem %s842_s10, 2048  ;;  %p844_p8 = scmp.lt.s32.totalorder %s1096_s4, %s842_s10 }
  0x43   : > { %p839_p1 = pnand %p837_p11, %p793_p3  ;;  %p845_p2 = scmp.lt.s32.totalorder %s843_s5, %s836_s18 }
  0x45   : > { %p840_p6 = pneg %p839_p1  ;;  %p846_p5 = por %p845_p2, %p844_p8 }
  0x47   : > { %p847_p4 = pnand %p846_p5, %p840_p6 }
  0x49   : > { %850 = shalt.err (!%p847_p4)
}
  0x4a   : > { %730 = dma.hbm_to_vmem [thread:$0]  (!%p1046_p0), %s1094_s29, 1024, %s1096_s4, %s206_s6, %s940_s7, %s940_s7, %s941_s11  }
  0x4b   : > { %243 = sbr.rel (%p1087_p12) target bundleno = 450 (0x1c2), region = 32  ;;  %s1130_s8 = sand.u32 (!%p1087_p12), 1, %s921_s13  }
  0x4c   : > { %s658_s19 = sshll.u32 (!%p1087_p12), %s1130_s8, 4  ;;  %s246_s22 = scalar_lea.sflag (!%p1087_p12), [#allocation4], %s1130_s8 }
  0x4d   : > { %s1134_s9 = scalar_lea.vmem (!%p1087_p12), [#allocation3], %s658_s19  ;;  %p1226_p8 = scmp.ne.s32.totalorder (!%p1087_p12), %s1220_s24, 0 }
  0x52   : > { %904 = dma.done.wait (%p1226_p8), %s246_s22, 256  }
  0x53   : > { %906 = vsyncadd (%p1226_p8), %s246_s22, 4294967040  ;;  %s659_s28 = sshll.u32 %s1130_s8, 6  ;;  %s255_s7 = scalar_lea.sflag [#allocation7], %s1130_s8 }
  0x54   : > { %s258_s11 = scalar_lea.vmem [#allocation6], %s659_s28 }
  0x55   : > { %908 = dma.done.wait (%p1226_p8), %s255_s7, 1024  }
  0x56   : > { %910 = vsyncadd (%p1226_p8), %s255_s7, 4294966272  ;;  %vm308_vm0 = vcmask 261120   ;;  %v943_v0 = vmov 0.0|0.0   ;;  %v944_v1 = vmov 0.0   ;;  %vm945_vm1 = vmmov 0   ;;  %v319_v2 = vld [vmem:[%s258_s11 + $0x20] sm:$0xff] }
  0x57   : > { %712 = vmatprep.subr.bf16.mxu1 %v943_v0  ;;  %309 = vst.msk [vmem:[#allocation2] sm:$0xff] %vm308_vm0, %v944_v1  ;;  %310 = vst.msk [vmem:[#allocation2 + $0x8] sm:$0xff] %vm308_vm0, %v944_v1  ;;  %703 = vmatprep.mubr.msk.f32.mxu1 %vm945_vm1, %v944_v1  ;;  %v320_v3 = vld [vmem:[%s258_s11 + $0x28] sm:$0xff]  ;;  %v321_v4 = vld [vmem:[%s258_s11 + $0x30] sm:$0xff]  ;;  %s661_s24 = sshll.u32 %s929_s15, 1  ;;  %s660_s6 = sshll.u32 %s1130_s8, 3 }
  0x58   : > { %706 = vmatprep.subr.bf16.mxu0 %v943_v0  ;;  %692 = vmatprep.mubr.msk.f32.mxu0 %vm945_vm1, %v944_v1  ;;  %v713_v5 = vpack.c.bf16 %v320_v3, %v319_v2  ;;  %v322_v6 = vld [vmem:[%s258_s11 + $0x38] sm:$0xff]  ;;  %v315_v7 = vld [vmem:[%s258_s11] sm:$0xff]  ;;  %v316_v8 = vld [vmem:[%s258_s11 + $0x8] sm:$0xff]  ;;  %p297_p0 = scmp.lt.s32.totalorder %s661_s24, 3  ;;  %s946_s23 = smov 32   ;;  %vm502_vm2 = vcmask 523520  }
  0x59   : > { %v317_v9 = vld [vmem:[%s258_s11 + $0x10] sm:$0xff]  ;;  %v318_v10 = vld [vmem:[%s258_s11 + $0x18] sm:$0xff]  ;;  %v716_v11 = vpack.c.bf16 %v322_v6, %v321_v4  ;;  %v707_v12 = vpack.c.bf16 %v316_v8, %v315_v7  ;;  %s292_s18 = scalar_lea.vmem [#allocation8], %s660_s6  ;;  %s668_s30 = sshll.u32 %s929_s15, 7 }
  0x5a   : > { %714 = vmatpush3.bf16.msra.mxu1 %v713_v5  ;;  %v710_v13 = vpack.c.bf16 %v318_v10, %v317_v9  ;;  %v314_v14 = vld [vmem:[%s1134_s9 + $0x8] sm:$0xff]  ;;  %v313_v15 = vld [vmem:[%s1134_s9] sm:$0xff]  ;;  %s1238_s24 = smov (!%p297_p0, %s661_s24), 3  ;;  %s519_s10 = sshll.u32 %s292_s18, 4  ;;  %s1166_s10 = int_to_ptr.vmem [resolvable:$true] %s519_s10 }
  0x5b   : > { %715 = vmatprep.subr.bf16.mxu1 %v943_v0  ;;  %708 = vmatpush3.bf16.msra.mxu0 %v707_v12  ;;  %s302_s4 = scalar_lea.vmem %s1215_s2, %s1238_s24  ;;  %s1164_s22 = scalar_lea.hbm %s1216_s3, %s668_s30 }
  0x5c   : > { %709 = vmatprep.subr.bf16.mxu0 %v943_v0  ;;  %v666_v24 = vld [vmem:[%s302_s4 + $0x1] ss:$0 sm:$0xff]  ;;  %v664_v25 = vld [vmem:[%s302_s4] ss:$0 sm:$0xff]  ;;  %s505_s9 = scalar_lea.sflag [#allocation5], %s1130_s8  ;;  %s851_s28 = scalar_lea.vmem %s1166_s10, 128 }
  0x5d   : > { %p852_p3 = scmp.ne.s32.totalorder %s1166_s10, %s851_s28  ;;  %p1227_p12 = scmp.ne.s32.totalorder %s1221_s25, 0 }
  0x5e   : > { %717 = vmatpush3.bf16.msra.mxu1 %v716_v11  ;;  %v312_v16 = vld [vmem:[#allocation2 + $0x8] sm:$0xff]  ;;  %v311_v18 = vld [vmem:[#allocation2] sm:$0xff]  ;;  %s947_s15 = smov [#allocation8]  }
  0x5f   : > { %711 = vmatpush3.bf16.msra.mxu0 %v710_v13  ;;  %p853_p13 = pnand %p852_p3, %p1227_p12  ;;  %s855_s7 = sshll.u32 %s947_s15, 4  ;;  %s856_s7 = int_to_ptr.vmem [resolvable:$false] %s855_s7 }
  0x60   : > { %s857_s11 = scalar_lea.vmem %s856_s7, 256  ;;  %p858_p10 = scmp.lt.s32.totalorder %s1166_s10, %s856_s7 }
  0x61   : > { %704 = vmatmul.mubr.msk.f32.vlgmr.msra.gmra.mrb[0].mxu1 %vm308_vm0, %v314_v14  ;;  %p854_p7 = pneg %p853_p13  ;;  %p859_p9 = scmp.lt.s32.totalorder %s857_s11, %s851_s28 }
  0x62   : > { %693 = vmatmul.mubr.msk.f32.vlgmr.msra.gmra.mrb[0].mxu0 %vm308_vm0, %v313_v15 }
  0x63   : > { %p860_p11 = por %p859_p9, %p858_p10 }
  0x65   : > { %p861_p1 = pnand %p860_p11, %p854_p7 }
 0x134   : > { %v466_v17 = vpop.f32.mrb[0].mxu1 }
 0x135   : > { %v471_v19 = vadd.f32 %v466_v17, %v312_v16  ;;  %v705_v20 = vpop.f32.mrb[1].mxu1  ;;  %v393_v21 = vpop.f32.mrb[0].mxu0 }
 0x136   : > { %v470_v22 = vadd.f32 %v393_v21, %v311_v18  ;;  %v694_v23 = vpop.f32.mrb[1].mxu0 }
 0x137   : > { %473 = vst.msk [vmem:[#allocation2 + $0x8] sm:$0xff] %vm308_vm0, %v471_v19 }
 0x138   : > { %472 = vst.msk [vmem:[#allocation2] sm:$0xff] %vm308_vm0, %v470_v22 }
 0x13e   : > { %v488_v26 = vld [vmem:[#allocation2 + $0x8] sm:$0xff] }
 0x13f   : > { %v497_v27 = vadd.f32 %v666_v24, %v488_v26  ;;  %v477_v28 = vld [vmem:[#allocation2] sm:$0xff] }
 0x140   : > { %v485_v29 = vadd.f32 %v664_v25, %v477_v28 }
 0x141   : > { %499 = vrot.lane.b32.xlu0 %v497_v27, %s946_s23 }
 0x142   : > { %486 = vst.msk [vmem:[%s292_s18] sm:$0xff] %vm308_vm0, %v485_v29 }
 0x1b3   : > { %v500_v30 = vpop.permute.xlu0 %499 }
 0x1b4   : > { %503 = vst.msk [vmem:[%s292_s18] sm:$0xff] %vm502_vm2, %v500_v30 }
 0x1b5   : > { %864 = shalt.err (!%p861_p1)
}
 0x1b6   : > { %s865_s8 = scalar_lea.hbm %s1164_s22, 128  ;;  %s869_s29 = scalar_lea.hbm %s1216_s3, 256 }
 0x1b7   : > { %p866_p6 = scmp.ne.s32.totalorder %s1164_s22, %s865_s8  ;;  %p870_p4 = scmp.lt.u32.totalorder %s1164_s22, %s1216_s3 }
 0x1b8   : > { %p871_p8 = scmp.lt.u32.totalorder %s869_s29, %s865_s8  ;;  %p873_p3 = scmp.lt.u32.totalorder %s865_s8, %s1164_s22 }
 0x1b9   : > { %p867_p2 = pnand %p866_p6, %p1227_p12 }
 0x1ba   : > { %p872_p0 = por %p871_p8, %p870_p4 }
 0x1bb   : > { %p868_p5 = pneg %p867_p2 }
 0x1bc   : > { %p874_p13 = por %p873_p3, %p872_p0 }
 0x1be   : > { %p875_p7 = pnand %p874_p13, %p868_p5 }
 0x1c0   : > { %878 = shalt.err (!%p875_p7)
}
 0x1c1   : > { %722 = dma.vmem_to_hbm [thread:$0]  (%p1227_p12), %s1166_s10, 128, %s1164_s22, %s505_s9  }
 0x1c2 PF: > { %s531_s23 = sand.u32 1, %s917_s12   ;;  %p1228_p10 = scmp.ne.s32.totalorder %s1222_s27, 0 }
 0x1c3   : > { %p1229_p9 = scmp.ge.s32.totalorder %s937_s17, 2  ;;  %s532_s18 = scalar_lea.sflag [#allocation5], %s531_s23 }
 0x1c5   : > { %p732_p11 = pnand %p1229_p9, %p1228_p10 }
 0x1c7   : > { %912 = dma.done.wait (!%p732_p11), %s532_s18, 128  }
 0x1c8   : > { %914 = vsyncadd (!%p732_p11), %s532_s18, 4294967168  ;;  %s22_s17 = sadd.s32 1, %s937_s17   ;;  %s1230_s12 = smov %s921_s13 }
 0x1c9   : > { %p19_p1 = scmp.ge.s32.totalorder %s22_s17, 4   ;;  %s1231_s13 = smov %s925_s14 }
 0x1ca   : > { %s1232_s14 = smov %s1024_s26  ;;  %s1233_s15 = smov %s933_s16 }
 0x1cb   : > { %s1234_s16 = smov %s1236_s20  ;;  %21 = sbr.rel (!%p19_p1) target bundleno = 8 (0x8), region = 103 }
 0x1d2   :  { %537 = vsyncpa [#allocation4], 1 }
 0x1d3   :  { %539 = vsyncpa [#allocation4 + $0x1], 1 }
 0x1d4   :  { %540 = vsyncpa [#allocation7], 1 }
 0x1d5   :  { %542 = vsyncpa [#allocation7 + $0x1], 1 }
 0x1d6   :  { %543 = vsyncpa [#allocation5], 1 }
 0x1d7   :  { %545 = vsyncpa [#allocation5 + $0x1], 1 }

</bundles_post_ra>
